<compile_context>
chip_gen: v7x
topology: tpu7x:2x2x1
jax: 0.10.0
libtpu: 0.0.40
codegen_flags: <defaults>
</compile_context>

<pallas_src>
import jax
import jax.numpy as jnp
from jax.experimental import pallas as pl
from jax.experimental.pallas import tpu as pltpu


def _round_up(x, m):
    return ((x + m - 1) // m) * m


def attention_heads_kernel(x_ref, w_ref, b_ref, o_ref):
    """Fused multi-head 2-way-softmax attention.

    w_ref packs [W0 | W1] along lanes; for every head i (one output lane):
        z0 = x @ W0[:, i] + b0[i],  z1 = x @ W1[:, i] + b1[i]
        out[:, i] = softmax([tanh(z0), tanh(z1)])[1]
                  = 0.5 * (1 + tanh(0.5 * (tanh(z1) - tanh(z0))))
    One MXU dot with f32 accumulation; tanh epilogue runs on the EUP slot.
    """
    n_pad = w_ref.shape[-1] // 2          # lane boundary between W0 and W1 (mult. of 128)
    n_out = o_ref.shape[-1]               # real number of heads (<= n_pad)

    z = jnp.dot(x_ref[...], w_ref[...], preferred_element_type=jnp.float32)
    t = jnp.tanh(z + b_ref[...])          # tanh of both logit halves at once
    diff = t[:, n_pad:] - t[:, :n_pad]    # tanh(z1) - tanh(z0), vreg-aligned split
    a = 0.5 * (1.0 + jnp.tanh(0.5 * diff))  # = sigmoid(diff), no exp / no divide
    o_ref[...] = a[:, :n_out].astype(o_ref.dtype)


def pack_attention_params(weights, biases):
    """Pack per-head nn.Linear params once (hoisted out of the per-call path).

    weights: (n_heads, 2, E_node)  -- nn.Linear weight of each head
    biases:  (n_heads, 2)
    Returns (w_packed: (E_node, 2*n_pad), b_packed: (1, 2*n_pad)) with
    n_pad = round_up(n_heads, 128): class-0 columns in lanes [0, n_pad),
    class-1 columns in lanes [n_pad, 2*n_pad); padded lanes are zero.
    """
    n_heads, two, e_node = weights.shape
    assert two == 2
    n_pad = _round_up(n_heads, 128)
    dtype = weights.dtype

    w = jnp.zeros((e_node, 2 * n_pad), dtype)
    w = w.at[:, :n_heads].set(weights[:, 0, :].T)
    w = w.at[:, n_pad:n_pad + n_heads].set(weights[:, 1, :].T)

    b = jnp.zeros((1, 2 * n_pad), jnp.float32)
    b = b.at[0, :n_heads].set(biases[:, 0].astype(jnp.float32))
    b = b.at[0, n_pad:n_pad + n_heads].set(biases[:, 1].astype(jnp.float32))
    return w, b


def attention_model_forward(E, w_packed, b_packed, n_heads, *, block_rows=1024):
    """E: (B, E_node). Returns squeeze of the (B, n_heads) attention matrix,
    identical to Attention_Model.forward."""
    B, e_node = E.shape
    two_n_pad = w_packed.shape[1]
    dtype = E.dtype

    # Rows padded only to the 8-sublane requirement (no round-up to the tile).
    b_pad = _round_up(B, 8)
    x = E
    if b_pad != B:
        x = jnp.zeros((b_pad, e_node), dtype).at[:B].set(E)

    # Row tile: multiple of 8, capped at the padded batch; pl.cdiv grid handles a
    # partial trailing block so large non-dividing batches cost no extra compute.
    tm = min(_round_up(block_rows, 8), b_pad)
    grid_m = pl.cdiv(b_pad, tm)
    # v7x has 2 TensorCores; give the "parallel" row axis >=2 steps when there
    # are enough rows for both cores to get a useful (>=128-row) tile.
    if grid_m < 2 and b_pad >= 256:
        tm = max(128, _round_up(pl.cdiv(b_pad, 2), 8))
        grid_m = pl.cdiv(b_pad, tm)

    out = pl.pallas_call(
        attention_heads_kernel,
        out_shape=jax.ShapeDtypeStruct((b_pad, n_heads), dtype),
        grid=(grid_m,),
        in_specs=[
            pl.BlockSpec((tm, e_node), lambda i: (i, 0)),        # x row tile
            pl.BlockSpec((e_node, two_n_pad), lambda i: (0, 0)),  # [W0|W1] resident
            pl.BlockSpec((1, two_n_pad), lambda i: (0, 0)),       # [b0|b1] resident
        ],
        out_specs=pl.BlockSpec((tm, n_heads), lambda i: (i, 0)),
        compiler_params=pltpu.CompilerParams(
            dimension_semantics=("parallel",),
        ),
    )(x, w_packed, b_packed)

    if b_pad != B:
        out = out[:B]
    # Mirror the trailing torch.squeeze.
    return jnp.squeeze(out)


if __name__ == "__main__":
    # Small shapes consistent with the module: E_node = 32, in_size = 32 heads.
    B, E_NODE, IN_SIZE = 8, 32, 32

    key = jax.random.PRNGKey(0)
    ke, kw, kb = jax.random.split(key, 3)

    E = jax.random.normal(ke, (B, E_NODE), dtype=jnp.float32)

    # Deterministic nn.Linear-style init per head: U(-1/sqrt(fan_in), 1/sqrt(fan_in)).
    bound = 1.0 / (E_NODE ** 0.5)
    weights = jax.random.uniform(
        kw, (IN_SIZE, 2, E_NODE), minval=-bound, maxval=bound, dtype=jnp.float32
    )
    biases = jax.random.uniform(
        kb, (IN_SIZE, 2), minval=-bound, maxval=bound, dtype=jnp.float32
    )

    # Pack once (hoisted out of the per-call path), then run the kernel.
    w_packed, b_packed = pack_attention_params(weights, biases)
    out = attention_model_forward(E, w_packed, b_packed, IN_SIZE)
    out = jax.block_until_ready(out)

    # Reference in plain JAX (identical semantics to the PyTorch module).
    z = jnp.einsum("be,nae->bna", E, weights) + biases          # (B, in_size, 2)
    s = jax.nn.softmax(jnp.tanh(z), axis=-1)                    # softmax over the 2 logits
    ref = jnp.squeeze(s[:, :, 1])                               # (B, in_size)

    assert out.shape == ref.shape == (B, IN_SIZE)
    assert jnp.allclose(out, ref, atol=1e-5, rtol=1e-5)

    print("KERNEL_OK")
</pallas_src>

<mosaic_0001>
module attributes {stable_mosaic.version = 11 : i64} {
  func.func @attention_heads_kernel(%arg0: i32, %arg1: memref<8x32xf32, #tpu.memory_space<vmem>>, %arg2: memref<32x256xf32, #tpu.memory_space<vmem>>, %arg3: memref<1x256xf32, #tpu.memory_space<vmem>>, %arg4: memref<8x32xf32, #tpu.memory_space<vmem>>) attributes {dimension_semantics = [#tpu.dimension_semantics<parallel>], iteration_bounds = array<i64: 1>, scalar_prefetch = 0 : i64, scratch_operands = 0 : i64, tpu.core_type = #tpu.core_type<tc>, window_params = [{transform_indices = @transform_0, window_bounds = array<i64: 8, 32>}, {pipeline_mode = #tpu.pipeline_mode<synchronous>, transform_indices = @transform_1, window_bounds = array<i64: 32, 256>}, {pipeline_mode = #tpu.pipeline_mode<synchronous>, transform_indices = @transform_2, window_bounds = array<i64: 1, 256>}, {transform_indices = @transform_3, window_bounds = array<i64: 8, 32>}]} {
    %c0 = arith.constant 0 : index
    %c0_0 = arith.constant 0 : index
    %0 = vector.load %arg1[%c0, %c0_0] : memref<8x32xf32, #tpu.memory_space<vmem>>, vector<8x32xf32>
    %c0_1 = arith.constant 0 : index
    %c0_2 = arith.constant 0 : index
    %1 = vector.load %arg2[%c0_1, %c0_2] : memref<32x256xf32, #tpu.memory_space<vmem>>, vector<32x256xf32>
    %cst = arith.constant dense<0.000000e+00> : vector<8x256xf32>
    %2 = tpu.matmul %0, %1, %cst {dimension_numbers = #tpu.dot_dimension_numbers<[1], [0], [0], [1], [0, 0, 1, 1], [], []>} : vector<8x32xf32>, vector<32x256xf32>, vector<8x256xf32> -> vector<8x256xf32>
    %c0_3 = arith.constant 0 : index
    %c0_4 = arith.constant 0 : index
    %3 = vector.load %arg3[%c0_3, %c0_4] : memref<1x256xf32, #tpu.memory_space<vmem>>, vector<1x256xf32>
    %4 = vector.broadcast %3 : vector<1x256xf32> to vector<8x256xf32>
    %5 = arith.addf %2, %4 : vector<8x256xf32>
    %6 = math.tanh %5 : vector<8x256xf32>
    %7 = vector.extract_strided_slice %6 {offsets = [0, 128], sizes = [8, 128], strides = [1, 1]} : vector<8x256xf32> to vector<8x128xf32>
    %8 = vector.extract_strided_slice %6 {offsets = [0, 0], sizes = [8, 128], strides = [1, 1]} : vector<8x256xf32> to vector<8x128xf32>
    %9 = arith.subf %7, %8 : vector<8x128xf32>
    %cst_5 = arith.constant 5.000000e-01 : f32
    %10 = vector.broadcast %cst_5 : f32 to vector<8x128xf32>
    %11 = arith.mulf %10, %9 : vector<8x128xf32>
    %12 = math.tanh %11 : vector<8x128xf32>
    %cst_6 = arith.constant 1.000000e+00 : f32
    %13 = vector.broadcast %cst_6 : f32 to vector<8x128xf32>
    %14 = arith.addf %13, %12 : vector<8x128xf32>
    %cst_7 = arith.constant 5.000000e-01 : f32
    %15 = vector.broadcast %cst_7 : f32 to vector<8x128xf32>
    %16 = arith.mulf %15, %14 : vector<8x128xf32>
    %17 = vector.extract_strided_slice %16 {offsets = [0, 0], sizes = [8, 32], strides = [1, 1]} : vector<8x128xf32> to vector<8x32xf32>
    %c0_8 = arith.constant 0 : index
    %c0_9 = arith.constant 0 : index
    %18 = vector.load %arg4[%c0_8, %c0_9] : memref<8x32xf32, #tpu.memory_space<vmem>>, vector<8x32xf32>
    tpu.vector_store %arg4[%c0_8, %c0_9], %17 {strides = array<i32>} : memref<8x32xf32, #tpu.memory_space<vmem>>, vector<8x32xf32>,
    return
  }
  func.func @transform_0(%arg0: i32) -> (i32, i32) {
    %c0_i32 = arith.constant 0 : i32
    %c0_i32_0 = arith.constant 0 : i32
    return %arg0, %c0_i32 : i32, i32
  }
  func.func @transform_1(%arg0: i32) -> (i32, i32) {
    %c0_i32 = arith.constant 0 : i32
    %c0_i32_0 = arith.constant 0 : i32
    %c0_i32_1 = arith.constant 0 : i32
    return %c0_i32, %c0_i32_0 : i32, i32
  }
  func.func @transform_2(%arg0: i32) -> (i32, i32) {
    %c0_i32 = arith.constant 0 : i32
    %c0_i32_0 = arith.constant 0 : i32
    %c0_i32_1 = arith.constant 0 : i32
    return %c0_i32, %c0_i32_0 : i32, i32
  }
  func.func @transform_3(%arg0: i32) -> (i32, i32) {
    %c0_i32 = arith.constant 0 : i32
    %c0_i32_0 = arith.constant 0 : i32
    return %arg0, %c0_i32 : i32, i32
  }
}

</mosaic_0001>

<bundles_post_ra>
// kernel: tpu_custom_call.1
= control target key start
LH: loop header
LB: loop body
LE: loop exit
PB: predicated region body
PF: predicated region fallthrough
CT: control target
= control target key end

     0   :  { %8 = vsyncpa [#allocation3], 0  ;;  %s328_s0 = inlined_call_operand.hbm [shape: f32[8,32], index: 0, kind: input, shape index: {}]   ;;  %s329_s1 = inlined_call_operand.hbm [shape: f32[32,256], index: 1, kind: input, shape index: {}]   ;;  %s330_s2 = inlined_call_operand.vmem [shape: f32[1,256], index: 2, kind: input, shape index: {}]   ;;  %s331_s3 = inlined_call_operand.hbm [shape: f32[8,32], index: 3, kind: output, shape index: {}]  }
   0x1   :  { %9 = vsyncpa [#allocation6], 0 }
   0x2   :  { %10 = vsyncpa [#allocation4], 0  ;;  %s254_s12 = smov [#allocation2]   ;;  %s255_s14 = smov [#allocation5]  }
   0x3   :  { %s17_s13 = sshll.u32 %s254_s12, 4  ;;  %s26_s15 = sshll.u32 %s255_s14, 4  ;;  %s18_s13 = int_to_ptr.vmem [resolvable:$true] %s17_s13  ;;  %s280_s15 = int_to_ptr.vmem [resolvable:$true] %s26_s15 }
   0x4   :  { %s182_s18 = scalar_lea.hbm %s328_s0, 128 }
   0x5   :  { %p183_p0 = scmp.ne.s32.totalorder %s328_s0, %s182_s18  ;;  %p186_p1 = scmp.lt.u32.totalorder %s182_s18, %s328_s0 }
   0x7   :  { %p188_p2 = pnand %p186_p1, %p183_p0 }
   0x9   :  { %191 = shalt.err (!%p188_p2)
}
   0xa   :  { %s192_s23 = scalar_lea.vmem %s18_s13, 128  ;;  %p197_p4 = scmp.lt.s32.totalorder %s18_s13, %s18_s13 }
   0xb   :  { %p193_p3 = scmp.ne.s32.totalorder %s18_s13, %s192_s23  ;;  %p198_p5 = scmp.lt.s32.totalorder %s192_s23, %s192_s23 }
   0xd   :  { %p199_p6 = por %p198_p5, %p197_p4 }
   0xf   :  { %p200_p7 = pnand %p199_p6, %p193_p3 }
  0x11   :  { %203 = shalt.err (!%p200_p7)
}
  0x12   :  { %20 = dma.hbm_to_vmem [thread:$0]  %s328_s0, 128, %s18_s13, [#allocation3]  }
  0x13   :  { %s204_s28 = scalar_lea.hbm %s329_s1, 1024 }
  0x14   :  { %p205_p8 = scmp.ne.s32.totalorder %s329_s1, %s204_s28  ;;  %p208_p9 = scmp.lt.u32.totalorder %s204_s28, %s329_s1 }
  0x16   :  { %p210_p10 = pnand %p208_p9, %p205_p8 }
  0x18   :  { %213 = shalt.err (!%p210_p10)
}
  0x19   :  { %s214_s6 = scalar_lea.vmem %s280_s15, 1024  ;;  %p219_p12 = scmp.lt.s32.totalorder %s280_s15, %s280_s15 }
  0x1a   :  { %p215_p11 = scmp.ne.s32.totalorder %s280_s15, %s214_s6  ;;  %p220_p13 = scmp.lt.s32.totalorder %s214_s6, %s214_s6 }
  0x1c   :  { %p221_p0 = por %p220_p13, %p219_p12 }
  0x1e   :  { %p222_p1 = pnand %p221_p0, %p215_p11 }
  0x20   :  { %225 = shalt.err (!%p222_p1)
}
  0x21   :  { %s256_s0 = smov 256   ;;  %s257_s7 = smov 16  }
  0x22   :  { %32 = dma.hbm_to_vmem [thread:$0]  %s329_s1, 1024, %s280_s15, [#allocation6], %s256_s0, %s256_s0, %s257_s7  }
  0x23   :  { %248 = dma.done.wait [#allocation3], 128  }
  0x24   :  { %249 = vsyncadd [#allocation3], 4294967168 }
  0x25   :  { %250 = dma.done.wait [#allocation6], 1024  }
  0x26   :  { %251 = vsyncadd [#allocation6], 4294966272  ;;  %v258_v0 = vmov 0.0   ;;  %v43_v1 = vld [vmem:[#allocation5 + $0x8] sm:$0xff]  ;;  %v45_v2 = vld [vmem:[#allocation5 + $0x18] sm:$0xff]  ;;  %vm62_vm0 = vcmask 261120   ;;  %v52_v14 = vlaneseq }
  0x27   :  { %130 = vmatprep.mubr.f32.mxu0 %v258_v0  ;;  %v42_v3 = vld [vmem:[#allocation5] sm:$0xff]  ;;  %v162_v4 = vpack.c.bf16 %v45_v2, %v43_v1  ;;  %v44_v5 = vld [vmem:[#allocation5 + $0x10] sm:$0xff]  ;;  %v47_v6 = vld [vmem:[#allocation5 + $0x28] sm:$0xff]  ;;  %s259_s11 = smov [#allocation7]  }
  0x28   :  { %v49_v7 = vld [vmem:[#allocation5 + $0x38] sm:$0xff]  ;;  %v164_v8 = vpack.c.bf16 %v44_v5, %v42_v3  ;;  %v46_v10 = vld [vmem:[#allocation5 + $0x20] sm:$0xff]  ;;  %v48_v11 = vld [vmem:[#allocation5 + $0x30] sm:$0xff]  ;;  %v53_v15 = vshrl.u32 %v52_v14, 7  ;;  %s151_s12 = sshll.u32 %s259_s11, 4  ;;  %s152_s12 = int_to_ptr.vmem [resolvable:$true] %s151_s12 }
  0x29   :  { %v166_v9 = vpack.c.bf16 %v49_v7, %v47_v6  ;;  %163 = vmatprep.subr.bf16.mxu0 %v162_v4  ;;  %v168_v12 = vpack.c.bf16 %v48_v11, %v46_v10  ;;  %v41_v13 = vld [vmem:[#allocation2] sm:$0xff]  ;;  %p231_p3 = scmp.lt.s32.totalorder %s152_s12, %s152_s12 }
  0x2a   :  { %165 = vmatpush1.bf16.msra.mxu0 %v164_v8  ;;  %v54_v16 = vsub.s32 0, %v53_v15  ;;  %v50_v17 = vld [vmem:[%s330_s2] sm:$0x3]  ;;  %v58_v18 = vsub.s32 1, %v53_v15  ;;  %s226_s2 = scalar_lea.vmem %s152_s12, 128 }
  0x2b   :  { %167 = vmatprep.subr.bf16.mxu0 %v166_v9  ;;  %p227_p2 = scmp.ne.s32.totalorder %s152_s12, %s226_s2  ;;  %p232_p4 = scmp.lt.s32.totalorder %s226_s2, %s226_s2 }
  0x2c   :  { %v55_v19 = vrot.slane %v50_v17, %v54_v16  ;;  %v59_v20 = vrot.slane %v50_v17, %v58_v18 }
  0x2d   :  { %p233_p5 = por %p232_p4, %p231_p3 }
  0x2e   :  { %169 = vmatpush1.bf16.msra.mxu0 %v168_v12 }
  0x2f   :  { %p234_p6 = pnand %p233_p5, %p227_p2 }
  0x31   :  { %161 = vmatmul.mubr.msk.f32.vlgmr.msra.gmra.mrb[0].mxu0 %vm62_vm0, %v41_v13 }
 0x104   :  { %v132_v21 = vpop.f32.mrb[0].mxu0 }
 0x105   :  { %v133_v22 = vadd.f32 %v132_v21, %v55_v19  ;;  %v134_v23 = vpop.f32.mrb[1].mxu0 }
 0x106   :  { %v135_v24 = vadd.f32 %v134_v23, %v59_v20 }
 0x107   :  { %176 = vtanh.f32 %v133_v22 }
 0x108   :  { %178 = vtanh.f32 %v135_v24 }
 0x111   :  { %v177_v25 = vpop.eup %176 }
 0x112   :  { %v179_v26 = vpop.eup %178 }
 0x113   :  { %v139_v27 = vsub.f32 %v179_v26, %v177_v25 }
 0x115   :  { %v140_v28 = vmul.f32 0.5, %v139_v27 }
 0x117   :  { %180 = vtanh.f32 %v140_v28 }
 0x121   :  { %v181_v29 = vpop.eup %180 }
 0x122   :  { %v142_v30 = vadd.f32 1.0, %v181_v29 }
 0x124   :  { %v143_v31 = vmul.f32 0.5, %v142_v30 }
 0x126   :  { %144 = vst.msk [vmem:[#allocation7] sm:$0xff] %vm62_vm0, %v143_v31 }
 0x127   :  { %237 = shalt.err (!%p234_p6)
}
 0x128   :  { %s238_s15 = scalar_lea.hbm %s331_s3, 128 }
 0x129   :  { %p239_p7 = scmp.ne.s32.totalorder %s331_s3, %s238_s15  ;;  %p242_p8 = scmp.lt.u32.totalorder %s238_s15, %s331_s3 }
 0x12b   :  { %p244_p9 = pnand %p242_p8, %p239_p7 }
 0x12d   :  { %247 = shalt.err (!%p244_p9)
}
 0x12e   :  { %154 = dma.vmem_to_hbm [thread:$0]  %s152_s12, 128, %s331_s3, [#allocation4]  }
 0x12f   :  { %252 = dma.done.wait [#allocation4], 128  }
 0x130   :  { %253 = vsyncadd [#allocation4], 4294967168 }
 0x131   :  { %158 = vsyncpa [#allocation3], 1 }
 0x132   :  { %159 = vsyncpa [#allocation6], 1 }
 0x133   :  { %160 = vsyncpa [#allocation4], 1 }

</bundles_post_ra>
